<compile_context>
chip_gen: v7x
topology: tpu7x:2x2x1
jax: 0.10.0
libtpu: 0.0.40
codegen_flags: <defaults>
</compile_context>

<pallas_src>
import jax
import jax.numpy as jnp
from jax.experimental import pallas as pl
from jax.experimental.pallas import tpu as pltpu

NEGATIVE_SLOPE = 0.2
# Synthetic config (helpers.Config is unavailable): discriminatorUnits[i] ->
# Linear(units[i], units[i+1]). First unit must equal x_dim + label_dim.
DISCRIMINATOR_UNITS = [32, 64, 32, 1]
OUT_SUB = 8          # final-layer weight rows padded to one f32 sublane tile
MAX_TILE = 2048      # batch-tile cap (multiple of 128)


def _leaky(h):
    return jnp.where(h >= 0, h, NEGATIVE_SLOPE * h)


def _round_up(v, m):
    return (v + m - 1) // m * m


def _fused_disc_kernel(xT_ref, lT_ref,
                       w0xT_ref, w0lT_ref, b0_ref,
                       w1T_ref, b1_ref,
                       w2T_ref, b2_ref,
                       o_ref):
    """Whole 3-layer MLP, transposed orientation: activations are (feat, TB)."""
    # ---- Layer 1 (concat folded into two dots; bf16 MXU, f32 accumulate) ----
    h = jnp.dot(w0xT_ref[...], xT_ref[...], preferred_element_type=jnp.float32)
    h = h + jnp.dot(w0lT_ref[...], lT_ref[...], preferred_element_type=jnp.float32)
    h = _leaky(h + b0_ref[...])                 # f32 epilogue, bias broadcast over lanes

    # ---- Layer 2 ----
    h = jnp.dot(w1T_ref[...], h.astype(jnp.bfloat16),
                preferred_element_type=jnp.float32)
    h = _leaky(h + b1_ref[...])

    # ---- Layer 3 (weight rows zero-padded to OUT_SUB sublanes) ----
    h = jnp.dot(w2T_ref[...], h.astype(jnp.bfloat16),
                preferred_element_type=jnp.float32)
    h = _leaky(h + b2_ref[...])                 # (OUT_SUB, TB)
    out_f = o_ref.shape[1]
    o_ref[...] = h[:out_f, :].reshape(o_ref.shape).astype(o_ref.dtype)


def discriminator_forward(params, x, label):
    """x: (B, x_dim) f32, label: (B, label_dim) f32 -> (B, out_f) f32."""
    (w0, b0), (w1, b1), (w2, b2) = params
    B, x_dim = x.shape
    label_dim = label.shape[1]
    h1, h2, out_f = w0.shape[1], w1.shape[1], w2.shape[1]
    assert out_f <= OUT_SUB

    # ---- Batch tiling: big tiles (amortize per-grid-step overhead), but aim
    # for >= 2 grid steps so v7x can shard the batch across both TensorCores.
    Bp0 = _round_up(B, 128)
    half = _round_up((Bp0 + 1) // 2, 128)
    TB = max(128, min(MAX_TILE, half))
    Bp = _round_up(B, TB)
    grid = (Bp // TB,)

    # ---- Host-side prep: pad batch, cast to bf16, transpose (batch -> lanes).
    if Bp != B:
        x = jnp.pad(x, ((0, Bp - B), (0, 0)))
        label = jnp.pad(label, ((0, Bp - B), (0, 0)))
    xT = x.astype(jnp.bfloat16).T          # (x_dim, Bp)
    lT = label.astype(jnp.bfloat16).T      # (label_dim, Bp)

    # Weights: transposed, bf16; concat folded by splitting W0 row-wise.
    w0xT = w0[:x_dim].T.astype(jnp.bfloat16)      # (h1, x_dim)
    w0lT = w0[x_dim:].T.astype(jnp.bfloat16)      # (h1, label_dim)
    w1T = w1.T.astype(jnp.bfloat16)               # (h2, h1)
    w2T = (jnp.zeros((OUT_SUB, h2), jnp.float32)
           .at[:out_f].set(w2.T).astype(jnp.bfloat16))        # (OUT_SUB, h2)
    # Biases stay f32, shaped as columns (broadcast over the lane/batch axis).
    b0c = b0.reshape(h1, 1)
    b1c = b1.reshape(h2, 1)
    b2c = jnp.zeros((OUT_SUB, 1), jnp.float32).at[:out_f].set(b2.T)

    tiled_in = lambda i: (0, i)     # activations: full feature dim, batch-tiled lanes
    whole = lambda i: (0, 0)        # weights / biases: whole array, resident

    flops = 2 * Bp * ((x_dim + label_dim) * h1 + h1 * h2 + h2 * out_f)
    bytes_accessed = (
        Bp * (x_dim + label_dim) * 2                           # bf16 activations in
        + (w0xT.size + w0lT.size + w1T.size + w2T.size) * 2    # bf16 weights
        + (b0c.size + b1c.size + b2c.size) * 4                 # f32 biases
        + Bp * out_f * 4                                       # packed f32 output
    )

    out = pl.pallas_call(
        _fused_disc_kernel,
        out_shape=jax.ShapeDtypeStruct((grid[0], out_f, TB), jnp.float32),
        grid_spec=pltpu.PrefetchScalarGridSpec(
            num_scalar_prefetch=0,
            grid=grid,
            in_specs=[
                pl.BlockSpec((x_dim, TB), tiled_in),
                pl.BlockSpec((label_dim, TB), tiled_in),
                pl.BlockSpec(w0xT.shape, whole),
                pl.BlockSpec(w0lT.shape, whole),
                pl.BlockSpec(b0c.shape, whole),
                pl.BlockSpec(w1T.shape, whole),
                pl.BlockSpec(b1c.shape, whole),
                pl.BlockSpec(w2T.shape, whole),
                pl.BlockSpec(b2c.shape, whole),
            ],
            out_specs=pl.BlockSpec((1, out_f, TB), lambda i: (i, 0, 0)),
        ),
        compiler_params=pltpu.CompilerParams(
            dimension_semantics=("parallel",),
        ),
        cost_estimate=pl.CostEstimate(
            flops=flops, transcendentals=0, bytes_accessed=bytes_accessed),
    )(xT, lT, w0xT, w0lT, b0c, w1T, b1c, w2T, b2c)

    # (G, out_f, TB) -> (Bp, out_f) -> (B, out_f).  For out_f == 1 the
    # transpose is a degenerate-axis move (free in XLA).
    out = jnp.transpose(out, (0, 2, 1)).reshape(Bp, out_f)
    return out[:B]


def _reference_forward(params, x, label):
    """Pure-JAX reference matching the PyTorch forward (leaky_relu every layer)."""
    h = jnp.concatenate([x, label], axis=1)
    for (w, b) in params:
        h = h @ w + b
        h = jnp.where(h >= 0, h, NEGATIVE_SLOPE * h)
    return h


def init_params(key, units):
    """Deterministic init of the Linear stack: W (in, out), b (1, out)."""
    params = []
    for i in range(len(units) - 1):
        key, kw, kb = jax.random.split(key, 3)
        bound = 1.0 / jnp.sqrt(units[i])
        w = jax.random.uniform(kw, (units[i], units[i + 1]), jnp.float32,
                               minval=-bound, maxval=bound)
        b = jax.random.uniform(kb, (1, units[i + 1]), jnp.float32,
                               minval=-bound, maxval=bound)
        params.append((w, b))
    return params


if __name__ == "__main__":
    key = jax.random.PRNGKey(0)
    k_params, k_x, k_label = jax.random.split(key, 3)

    batch = 2
    x_dim = 24
    label_dim = DISCRIMINATOR_UNITS[0] - x_dim  # = 8

    params = init_params(k_params, DISCRIMINATOR_UNITS)
    x = jax.random.normal(k_x, (batch, x_dim), jnp.float32)
    label = jax.random.normal(k_label, (batch, label_dim), jnp.float32)

    out = discriminator_forward(params, x, label)
    jax.block_until_ready(out)
    assert out.shape == (batch, DISCRIMINATOR_UNITS[-1])

    ref = _reference_forward(params, x, label)
    assert float(jnp.max(jnp.abs(out - ref))) < 0.1  # bf16 MXU tolerance

    print("KERNEL_OK")
</pallas_src>

<mosaic_0001>
module attributes {stable_mosaic.version = 11 : i64} {
  func.func @_fused_disc_kernel(%arg0: i32, %arg1: memref<24x128xbf16, #tpu.memory_space<vmem>>, %arg2: memref<8x128xbf16, #tpu.memory_space<vmem>>, %arg3: memref<64x24xbf16, #tpu.memory_space<vmem>>, %arg4: memref<64x8xbf16, #tpu.memory_space<vmem>>, %arg5: memref<64x1xf32, #tpu.memory_space<vmem>>, %arg6: memref<32x64xbf16, #tpu.memory_space<vmem>>, %arg7: memref<32x1xf32, #tpu.memory_space<vmem>>, %arg8: memref<8x32xbf16, #tpu.memory_space<vmem>>, %arg9: memref<8x1xf32, #tpu.memory_space<vmem>>, %arg10: memref<1x1x128xf32, #tpu.memory_space<vmem>>) attributes {dimension_semantics = [#tpu.dimension_semantics<parallel>], iteration_bounds = array<i64: 1>, scalar_prefetch = 0 : i64, scratch_operands = 0 : i64, tpu.core_type = #tpu.core_type<tc>, window_params = [{transform_indices = @transform_0, window_bounds = array<i64: 24, 128>}, {transform_indices = @transform_1, window_bounds = array<i64: 8, 128>}, {pipeline_mode = #tpu.pipeline_mode<synchronous>, transform_indices = @transform_2, window_bounds = array<i64: 64, 24>}, {pipeline_mode = #tpu.pipeline_mode<synchronous>, transform_indices = @transform_3, window_bounds = array<i64: 64, 8>}, {pipeline_mode = #tpu.pipeline_mode<synchronous>, transform_indices = @transform_4, window_bounds = array<i64: 64, 1>}, {pipeline_mode = #tpu.pipeline_mode<synchronous>, transform_indices = @transform_5, window_bounds = array<i64: 32, 64>}, {pipeline_mode = #tpu.pipeline_mode<synchronous>, transform_indices = @transform_6, window_bounds = array<i64: 32, 1>}, {pipeline_mode = #tpu.pipeline_mode<synchronous>, transform_indices = @transform_7, window_bounds = array<i64: 8, 32>}, {pipeline_mode = #tpu.pipeline_mode<synchronous>, transform_indices = @transform_8, window_bounds = array<i64: 8, 1>}, {transform_indices = @transform_9, window_bounds = array<i64: 1, 1, 128>}]} {
    %c0 = arith.constant 0 : index
    %c0_0 = arith.constant 0 : index
    %0 = vector.load %arg3[%c0, %c0_0] : memref<64x24xbf16, #tpu.memory_space<vmem>>, vector<64x24xbf16>
    %c0_1 = arith.constant 0 : index
    %c0_2 = arith.constant 0 : index
    %1 = vector.load %arg1[%c0_1, %c0_2] : memref<24x128xbf16, #tpu.memory_space<vmem>>, vector<24x128xbf16>
    %cst = arith.constant dense<0.000000e+00> : vector<64x128xf32>
    %2 = tpu.matmul %0, %1, %cst {dimension_numbers = #tpu.dot_dimension_numbers<[1], [0], [0], [1], [0, 0, 1, 1], [], []>} : vector<64x24xbf16>, vector<24x128xbf16>, vector<64x128xf32> -> vector<64x128xf32>
    %c0_3 = arith.constant 0 : index
    %c0_4 = arith.constant 0 : index
    %3 = vector.load %arg4[%c0_3, %c0_4] : memref<64x8xbf16, #tpu.memory_space<vmem>>, vector<64x8xbf16>
    %c0_5 = arith.constant 0 : index
    %c0_6 = arith.constant 0 : index
    %4 = vector.load %arg2[%c0_5, %c0_6] : memref<8x128xbf16, #tpu.memory_space<vmem>>, vector<8x128xbf16>
    %cst_7 = arith.constant dense<0.000000e+00> : vector<64x128xf32>
    %5 = tpu.matmul %3, %4, %cst_7 {dimension_numbers = #tpu.dot_dimension_numbers<[1], [0], [0], [1], [0, 0, 1, 1], [], []>} : vector<64x8xbf16>, vector<8x128xbf16>, vector<64x128xf32> -> vector<64x128xf32>
    %6 = arith.addf %2, %5 : vector<64x128xf32>
    %c0_8 = arith.constant 0 : index
    %c0_9 = arith.constant 0 : index
    %7 = vector.load %arg5[%c0_8, %c0_9] : memref<64x1xf32, #tpu.memory_space<vmem>>, vector<64x1xf32>
    %8 = vector.broadcast %7 : vector<64x1xf32> to vector<64x128xf32>
    %9 = arith.addf %6, %8 : vector<64x128xf32>
    %cst_10 = arith.constant 0.000000e+00 : f32
    %10 = vector.broadcast %cst_10 : f32 to vector<64x128xf32>
    %11 = arith.cmpf oge, %9, %10 : vector<64x128xf32>
    %cst_11 = arith.constant 2.000000e-01 : f32
    %12 = vector.broadcast %cst_11 : f32 to vector<64x128xf32>
    %13 = arith.mulf %12, %9 : vector<64x128xf32>
    %14 = arith.select %11, %9, %13 : vector<64x128xi1>, vector<64x128xf32>
    %c0_12 = arith.constant 0 : index
    %c0_13 = arith.constant 0 : index
    %15 = vector.load %arg6[%c0_12, %c0_13] : memref<32x64xbf16, #tpu.memory_space<vmem>>, vector<32x64xbf16>
    %16 = arith.truncf %14 : vector<64x128xf32> to vector<64x128xbf16>
    %cst_14 = arith.constant dense<0.000000e+00> : vector<32x128xf32>
    %17 = tpu.matmul %15, %16, %cst_14 {dimension_numbers = #tpu.dot_dimension_numbers<[1], [0], [0], [1], [0, 0, 1, 1], [], []>} : vector<32x64xbf16>, vector<64x128xbf16>, vector<32x128xf32> -> vector<32x128xf32>
    %c0_15 = arith.constant 0 : index
    %c0_16 = arith.constant 0 : index
    %18 = vector.load %arg7[%c0_15, %c0_16] : memref<32x1xf32, #tpu.memory_space<vmem>>, vector<32x1xf32>
    %19 = vector.broadcast %18 : vector<32x1xf32> to vector<32x128xf32>
    %20 = arith.addf %17, %19 : vector<32x128xf32>
    %cst_17 = arith.constant 0.000000e+00 : f32
    %21 = vector.broadcast %cst_17 : f32 to vector<32x128xf32>
    %22 = arith.cmpf oge, %20, %21 : vector<32x128xf32>
    %cst_18 = arith.constant 2.000000e-01 : f32
    %23 = vector.broadcast %cst_18 : f32 to vector<32x128xf32>
    %24 = arith.mulf %23, %20 : vector<32x128xf32>
    %25 = arith.select %22, %20, %24 : vector<32x128xi1>, vector<32x128xf32>
    %c0_19 = arith.constant 0 : index
    %c0_20 = arith.constant 0 : index
    %26 = vector.load %arg8[%c0_19, %c0_20] : memref<8x32xbf16, #tpu.memory_space<vmem>>, vector<8x32xbf16>
    %27 = arith.truncf %25 : vector<32x128xf32> to vector<32x128xbf16>
    %cst_21 = arith.constant dense<0.000000e+00> : vector<8x128xf32>
    %28 = tpu.matmul %26, %27, %cst_21 {dimension_numbers = #tpu.dot_dimension_numbers<[1], [0], [0], [1], [0, 0, 1, 1], [], []>} : vector<8x32xbf16>, vector<32x128xbf16>, vector<8x128xf32> -> vector<8x128xf32>
    %c0_22 = arith.constant 0 : index
    %c0_23 = arith.constant 0 : index
    %29 = vector.load %arg9[%c0_22, %c0_23] : memref<8x1xf32, #tpu.memory_space<vmem>>, vector<8x1xf32>
    %30 = vector.broadcast %29 : vector<8x1xf32> to vector<8x128xf32>
    %31 = arith.addf %28, %30 : vector<8x128xf32>
    %cst_24 = arith.constant 0.000000e+00 : f32
    %32 = vector.broadcast %cst_24 : f32 to vector<8x128xf32>
    %33 = arith.cmpf oge, %31, %32 : vector<8x128xf32>
    %cst_25 = arith.constant 2.000000e-01 : f32
    %34 = vector.broadcast %cst_25 : f32 to vector<8x128xf32>
    %35 = arith.mulf %34, %31 : vector<8x128xf32>
    %36 = arith.select %33, %31, %35 : vector<8x128xi1>, vector<8x128xf32>
    %37 = vector.extract_strided_slice %36 {offsets = [0, 0], sizes = [1, 128], strides = [1, 1]} : vector<8x128xf32> to vector<1x128xf32>
    %38 = vector.shape_cast %37 : vector<1x128xf32> to vector<1x1x128xf32>
    %c0_26 = arith.constant 0 : index
    %c0_27 = arith.constant 0 : index
    %c0_28 = arith.constant 0 : index
    %39 = vector.load %arg10[%c0_26, %c0_27, %c0_28] : memref<1x1x128xf32, #tpu.memory_space<vmem>>, vector<1x1x128xf32>
    tpu.vector_store %arg10[%c0_26, %c0_27, %c0_28], %38 {strides = array<i32>} : memref<1x1x128xf32, #tpu.memory_space<vmem>>, vector<1x1x128xf32>,
    return
  }
  func.func @transform_0(%arg0: i32) -> (i32, i32) {
    %c0_i32 = arith.constant 0 : i32
    %c0_i32_0 = arith.constant 0 : i32
    return %c0_i32, %arg0 : i32, i32
  }
  func.func @transform_1(%arg0: i32) -> (i32, i32) {
    %c0_i32 = arith.constant 0 : i32
    %c0_i32_0 = arith.constant 0 : i32
    return %c0_i32, %arg0 : i32, i32
  }
  func.func @transform_2(%arg0: i32) -> (i32, i32) {
    %c0_i32 = arith.constant 0 : i32
    %c0_i32_0 = arith.constant 0 : i32
    %c0_i32_1 = arith.constant 0 : i32
    return %c0_i32, %c0_i32_0 : i32, i32
  }
  func.func @transform_3(%arg0: i32) -> (i32, i32) {
    %c0_i32 = arith.constant 0 : i32
    %c0_i32_0 = arith.constant 0 : i32
    %c0_i32_1 = arith.constant 0 : i32
    return %c0_i32, %c0_i32_0 : i32, i32
  }
  func.func @transform_4(%arg0: i32) -> (i32, i32) {
    %c0_i32 = arith.constant 0 : i32
    %c0_i32_0 = arith.constant 0 : i32
    %c0_i32_1 = arith.constant 0 : i32
    return %c0_i32, %c0_i32_0 : i32, i32
  }
  func.func @transform_5(%arg0: i32) -> (i32, i32) {
    %c0_i32 = arith.constant 0 : i32
    %c0_i32_0 = arith.constant 0 : i32
    %c0_i32_1 = arith.constant 0 : i32
    return %c0_i32, %c0_i32_0 : i32, i32
  }
  func.func @transform_6(%arg0: i32) -> (i32, i32) {
    %c0_i32 = arith.constant 0 : i32
    %c0_i32_0 = arith.constant 0 : i32
    %c0_i32_1 = arith.constant 0 : i32
    return %c0_i32, %c0_i32_0 : i32, i32
  }
  func.func @transform_7(%arg0: i32) -> (i32, i32) {
    %c0_i32 = arith.constant 0 : i32
    %c0_i32_0 = arith.constant 0 : i32
    %c0_i32_1 = arith.constant 0 : i32
    return %c0_i32, %c0_i32_0 : i32, i32
  }
  func.func @transform_8(%arg0: i32) -> (i32, i32) {
    %c0_i32 = arith.constant 0 : i32
    %c0_i32_0 = arith.constant 0 : i32
    %c0_i32_1 = arith.constant 0 : i32
    return %c0_i32, %c0_i32_0 : i32, i32
  }
  func.func @transform_9(%arg0: i32) -> (i32, i32, i32) {
    %c0_i32 = arith.constant 0 : i32
    %c0_i32_0 = arith.constant 0 : i32
    %c0_i32_1 = arith.constant 0 : i32
    return %arg0, %c0_i32, %c0_i32_0 : i32, i32, i32
  }
}

</mosaic_0001>

<bundles_post_ra>
// kernel: tpu_custom_call.1
= control target key start
LH: loop header
LB: loop body
LE: loop exit
PB: predicated region body
PF: predicated region fallthrough
CT: control target
= control target key end

     0   :  { %vm87_vm0 = vcmask 1043456   ;;  %vm74_vm1 = vcmask 64512   ;;  %v664_v6 = vmov 0   ;;  %vm185_vm2 = vcmask 195584   ;;  %s825_s0 = inlined_call_operand.vmem [shape: bf16[24,128], index: 0, kind: input, shape index: {}]   ;;  %s826_s1 = inlined_call_operand.vmem [shape: bf16[8,128], index: 1, kind: input, shape index: {}]   ;;  %s827_s2 = inlined_call_operand.vmem [shape: bf16[64,24], index: 2, kind: input, shape index: {}]   ;;  %s828_s3 = inlined_call_operand.vmem [shape: bf16[64,8], index: 3, kind: input, shape index: {}]   ;;  %s829_s4 = inlined_call_operand.vmem [shape: f32[64,1], index: 4, kind: input, shape index: {}]   ;;  %s830_s5 = inlined_call_operand.vmem [shape: bf16[32,64], index: 5, kind: input, shape index: {}]   ;;  %s831_s6 = inlined_call_operand.vmem [shape: f32[32,1], index: 6, kind: input, shape index: {}]   ;;  %s832_s7 = inlined_call_operand.vmem [shape: bf16[8,32], index: 7, kind: input, shape index: {}]   ;;  %s833_s8 = inlined_call_operand.vmem [shape: f32[8,1], index: 8, kind: input, shape index: {}]   ;;  %s834_s9 = inlined_call_operand.hbm [shape: f32[1,1,128], index: 9, kind: output, shape index: {}]  }
   0x1   :  { %v53_v0 = vld [vmem:[%s826_s1] sm:$0xf]  ;;  %v629_v3 = vld [vmem:[%s828_s3 + $0x8] sm:$0xff]   ;;  %v631_v5 = vld [vmem:[%s828_s3 + $0x10] sm:$0xff]   ;;  %626 = vset.pattern.permute.xlu0 %v664_v6  ;;  %627 = vset.pattern.permute.xlu1 %v664_v6 }
   0x2   :  { %v628_v1 = vld [vmem:[%s828_s3] sm:$0xff]   ;;  %620 = vmatprep.subr.msk.bf16.mxu0 %vm87_vm0, %v53_v0  ;;  %v89_v2 = vsel %vm87_vm0, %v53_v0, 0  ;;  %v633_v7 = vld [vmem:[%s825_s0 + $0x8] ss:$0 sps:$4 sm:$0xff]   ;;  %v632_v9 = vld [vmem:[%s828_s3 + $0x18] sm:$0xff]  }
   0x3   :  { %571 = vmatpush3.bf16.msra.mxu0 %v89_v2  ;;  %572 = vmatprep.mubr.msk.bf16.mxu0 %vm74_vm1, %v628_v1  ;;  %v630_v4 = vld [vmem:[%s825_s0] sm:$0xff]   ;;  %v199_v8 = vsel %vm87_vm0, %v633_v7, 0  ;;  %v268_v12 = vld [vmem:[%s829_s4 + $0x10] sm:$0xff]  ;;  %v267_v13 = vld [vmem:[%s829_s4 + $0x8] sm:$0xff] }
   0x4   :  { %580 = vmatprep.subr.bf16.mxu0 %v630_v4  ;;  %v634_v10 = vld [vmem:[%s827_s2] sm:$0xff]   ;;  %286 = vperm.xlu1 %627, %v268_v12   ;;  %v269_v14 = vld [vmem:[%s829_s4 + $0x18] sm:$0xff] }
   0x5   :  { %v266_v11 = vld [vmem:[%s829_s4] sm:$0xff] }
   0x6   :  { %573 = vmatmul.mubr.msk.bf16.vlgmr.msra.gmra.mrb[0].mxu0 %vm74_vm1, %v629_v3  ;;  %276 = vperm.xlu0 %626, %v266_v11   ;;  %v270_v15 = vld [vmem:[%s829_s4 + $0x20] sm:$0xff] }
   0x7   :  { %581 = vmatpush3.bf16.msra.mxu0 %v630_v4  ;;  %576 = vmatprep.mubr.msk.bf16.mxu0 %vm74_vm1, %v631_v5 }
   0x8   :  { %621 = vmatprep.subr.msk.bf16.mxu0 %vm87_vm0, %v633_v7  ;;  %291 = vperm.xlu1 %627, %v269_v14  }
   0xa   :  { %281 = vperm.xlu0 %626, %v267_v13  }
   0xb   :  { %583 = vmatpush3.bf16.msra.mxu0 %v199_v8 }
   0xe   :  { %577 = vmatmul.mubr.msk.bf16.gmra.mrb[4].mxu0 %vm74_vm1, %v632_v9 }
   0xf   :  { %584 = vmatprep.mubr.msk.bf16.mxu0 %vm185_vm2, %v634_v10 }
  0x10   :  { %14 = vsyncpa [#allocation3], 0  ;;  %v635_v16 = vld [vmem:[%s827_s2 + $0x8] sm:$0xff]   ;;  %v636_v18 = vld [vmem:[%s827_s2 + $0x10] sm:$0xff]   ;;  %296 = vperm.xlu0 %626, %v270_v15   ;;  %vm388_vm3 = vcmask 523264   ;;  %v665_v9 = vmov 0.0  }
  0x11   :  { %v271_v17 = vld [vmem:[%s829_s4 + $0x28] sm:$0xff]  ;;  %v272_v19 = vld [vmem:[%s829_s4 + $0x30] sm:$0xff]  ;;  %v273_v20 = vld [vmem:[%s829_s4 + $0x38] sm:$0xff]  ;;  %vm666_vm12 = vmmov 0   ;;  %vm465_vm1 = vcmask 261120   ;;  %s667_s10 = smov [#allocation2]  }
  0x12   :  { %301 = vperm.xlu1 %627, %v271_v17   ;;  %v354_v21 = vld [vmem:[%s831_s6] sm:$0xff]  ;;  %v637_v22 = vld [vmem:[%s827_s2 + $0x18] sm:$0xff]   ;;  %v355_v23 = vld [vmem:[%s831_s6 + $0x8] sm:$0xff]  ;;  %s519_s11 = sshll.u32 %s667_s10, 4  ;;  %s520_s11 = int_to_ptr.vmem [resolvable:$true] %s519_s11 }
  0x13   :  { %v356_v24 = vld [vmem:[%s831_s6 + $0x10] sm:$0xff]  ;;  %v357_v25 = vld [vmem:[%s831_s6 + $0x18] sm:$0xff]  ;;  %v459_v26 = vld [vmem:[%s833_s8] sm:$0xff]  ;;  %s640_s12 = scalar_lea.vmem %s520_s11, 16  ;;  %s644_s13 = scalar_lea.vmem %s520_s11, 32 }
  0x14   :  { %306 = vperm.xlu0 %626, %v272_v19   ;;  %v638_v27 = vld [vmem:[%s830_s5] sm:$0xff]   ;;  %v639_v8 = vld [vmem:[%s830_s5 + $0x8] sm:$0xff]   ;;  %p641_p0 = scmp.ne.s32.totalorder %s520_s11, %s640_s12  ;;  %p645_p1 = scmp.lt.s32.totalorder %s520_s11, %s520_s11 }
  0x15   :  { %600 = vmatprep.mubr.msk.bf16.mxu1 %vm388_vm3, %v638_v27  ;;  %p646_p2 = scmp.lt.s32.totalorder %s644_s13, %s640_s12 }
  0x16   :  { %585 = vmatmul.mubr.msk.bf16.vlgmr.msra.gmra.mrb[0].mxu0 %vm185_vm2, %v635_v16  ;;  %311 = vperm.xlu1 %627, %v273_v20  }
  0x17   :  { %588 = vmatprep.mubr.msk.bf16.mxu0 %vm185_vm2, %v636_v18  ;;  %p647_p3 = por %p646_p2, %p645_p1 }
  0x18   :  { %360 = vperm.xlu0 %626, %v354_v21  }
  0x19   :  { %p648_p4 = pnand %p647_p3, %p641_p0 }
  0x1a   :  { %365 = vperm.xlu1 %627, %v355_v23  }
  0x1c   :  { %370 = vperm.xlu0 %626, %v356_v24  }
  0x1e   :  { %589 = vmatmul.mubr.msk.bf16.gmra.mrb[4].mxu0 %vm185_vm2, %v637_v22  ;;  %375 = vperm.xlu1 %627, %v357_v25  }
  0x20   :  { %462 = vperm.xlu0 %626, %v459_v26  }
  0x83   :  { %v287_v29 = vpop.permute.xlu1 %286 }
  0x85   :  { %v277_v28 = vpop.permute.xlu0 %276 }
  0x87   :  { %v292_v31 = vpop.permute.xlu1 %291 }
  0x89   :  { %v282_v30 = vpop.permute.xlu0 %281 }
  0x8f   :  { %v297_v35 = vpop.permute.xlu0 %296 }
  0x91   :  { %v302_v41 = vpop.permute.xlu1 %301 }
  0x93   :  { %v307_v48 = vpop.permute.xlu0 %306 }
  0x95   :  { %v312_v56 = vpop.permute.xlu1 %311 }
  0x97   :  { %v361_v10 = vpop.permute.xlu0 %360 }
  0x99   :  { %v366_v11 = vpop.permute.xlu1 %365 }
  0x9b   :  { %v371_v12 = vpop.permute.xlu0 %370 }
  0x9d   :  { %v376_v16 = vpop.permute.xlu1 %375 }
  0xe9   :  { %v586_v32 = vpop.f32.mrb[0].mxu0 }
  0xea   :  { %v316_v33 = vadd.f32 %v586_v32, %v287_v29  ;;  %v235_v34 = vpop.f32.mrb[1].mxu0  ;;  %v456_v32 = vld [vmem:[%s832_s7] sm:$0xf] }
  0xeb   :  { %v314_v36 = vadd.f32 %v277_v28, %v235_v34  ;;  %v587_v37 = vpop.f32.mrb[2].mxu0 }
  0xec   :  { %v332_v38 = vmul.f32 0.2, %v316_v33  ;;  %v317_v39 = vadd.f32 %v587_v37, %v292_v31  ;;  %v238_v40 = vpop.f32.mrb[3].mxu0  ;;  %vm324_vm4 = vcmp.ge.f32.partialorder %v316_v33, 0.0 }
  0xed   :  { %v330_v42 = vmul.f32 0.2, %v314_v36  ;;  %v315_v43 = vadd.f32 %v282_v30, %v238_v40  ;;  %vm322_vm6 = vcmp.ge.f32.partialorder %v314_v36, 0.0 }
  0xee   :  { %vm325_vm5 = vcmp.ge.f32.partialorder %v317_v39, 0.0  ;;  %v333_v44 = vmul.f32 0.2, %v317_v39  ;;  %v340_v46 = vsel %vm324_vm4, %v316_v33, %v332_v38  ;;  %v463_v33 = vpop.permute.xlu0 %462 }
  0xef   :  { %v331_v45 = vmul.f32 0.2, %v315_v43  ;;  %vm323_vm7 = vcmp.ge.f32.partialorder %v315_v43, 0.0  ;;  %v338_v50 = vsel %vm322_vm6, %v314_v36, %v330_v42 }
  0xf0   :  { %v341_v47 = vsel %vm325_vm5, %v317_v39, %v333_v44 }
  0xf1   :  { %v590_v49 = vpop.f32.mrb[4].mxu0  ;;  %v339_v51 = vsel %vm323_vm7, %v315_v43, %v331_v45  ;;  %v351_v52 = vpack.c.bf16 %v341_v47, %v340_v46 }
  0xf2   :  { %v320_v53 = vadd.f32 %v590_v49, %v307_v48  ;;  %v251_v54 = vpop.f32.mrb[5].mxu0  ;;  %v350_v55 = vpack.c.bf16 %v339_v51, %v338_v50 }
  0xf3   :  { %v318_v57 = vadd.f32 %v297_v35, %v251_v54  ;;  %v591_v58 = vpop.f32.mrb[6].mxu0 }
  0xf4   :  { %v336_v59 = vmul.f32 0.2, %v320_v53  ;;  %v321_v60 = vadd.f32 %v591_v58, %v312_v56  ;;  %v254_v61 = vpop.f32.mrb[7].mxu0  ;;  %592 = vmatprep.subr.bf16.mxu1 %v350_v55  ;;  %vm328_vm8 = vcmp.ge.f32.partialorder %v320_v53, 0.0 }
  0xf5   :  { %v334_v62 = vmul.f32 0.2, %v318_v57  ;;  %v319_v63 = vadd.f32 %v302_v41, %v254_v61  ;;  %593 = vmatpush3.bf16.msra.mxu1 %v350_v55  ;;  %vm326_vm9 = vcmp.ge.f32.partialorder %v318_v57, 0.0 }
  0xf6   :  { %vm329_vm10 = vcmp.ge.f32.partialorder %v321_v60, 0.0  ;;  %v337_v0 = vmul.f32 0.2, %v321_v60  ;;  %594 = vmatprep.subr.bf16.mxu1 %v351_v52  ;;  %v344_v2 = vsel %vm328_vm8, %v320_v53, %v336_v59 }
  0xf7   :  { %vm327_vm11 = vcmp.ge.f32.partialorder %v319_v63, 0.0  ;;  %v335_v1 = vmul.f32 0.2, %v319_v63  ;;  %v342_v4 = vsel %vm326_vm9, %v318_v57, %v334_v62 }
  0xf8   :  { %v345_v3 = vsel %vm329_vm10, %v321_v60, %v337_v0 }
  0xf9   :  { %595 = vmatpush3.bf16.msra.mxu1 %v351_v52  ;;  %v343_v5 = vsel %vm327_vm11, %v319_v63, %v335_v1  ;;  %v353_v6 = vpack.c.bf16 %v345_v3, %v344_v2 }
  0xfa   :  { %v352_v7 = vpack.c.bf16 %v343_v5, %v342_v4 }
  0xfc   :  { %596 = vmatprep.subr.bf16.mxu1 %v352_v7 }
  0xfd   :  { %597 = vmatpush3.bf16.msra.mxu1 %v352_v7 }
  0xfe   :  { %598 = vmatprep.subr.bf16.mxu1 %v353_v6 }
 0x101   :  { %599 = vmatpush3.bf16.msra.mxu1 %v353_v6 }
 0x102   :  { %604 = vmatprep.subr.bf16.mxu1 %v665_v9 }
 0x104   :  { %601 = vmatmul.mubr.msk.bf16.vlgmr.msra.gmra.mrb[0].mxu1 %vm388_vm3, %v639_v8 }
 0x105   :  { %608 = vmatprep.mubr.msk.bf16.mxu1 %vm666_vm12, %v665_v9 }
 0x1d7   :  { %v602_v13 = vpop.f32.mrb[0].mxu1 }
 0x1d8   :  { %v438_v14 = vadd.f32 %v602_v13, %v371_v12  ;;  %v429_v15 = vpop.f32.mrb[1].mxu1 }
 0x1d9   :  { %v430_v17 = vadd.f32 %v429_v15, %v361_v10  ;;  %v603_v18 = vpop.f32.mrb[2].mxu1 }
 0x1da   :  { %v450_v19 = vmul.f32 0.2, %v438_v14  ;;  %v441_v20 = vadd.f32 %v603_v18, %v376_v16  ;;  %v432_v21 = vpop.f32.mrb[3].mxu1  ;;  %vm446_vm13 = vcmp.ge.f32.partialorder %v438_v14, 0.0 }
 0x1db   :  { %v448_v22 = vmul.f32 0.2, %v430_v17  ;;  %v433_v23 = vadd.f32 %v432_v21, %v366_v11  ;;  %vm444_vm14 = vcmp.ge.f32.partialorder %v430_v17, 0.0 }
 0x1dc   :  { %vm447_vm15 = vcmp.ge.f32.partialorder %v441_v20, 0.0  ;;  %v451_v24 = vmul.f32 0.2, %v441_v20  ;;  %v454_v26 = vsel %vm446_vm13, %v438_v14, %v450_v19 }
 0x1dd   :  { %vm445_vm0 = vcmp.ge.f32.partialorder %v433_v23, 0.0  ;;  %v449_v25 = vmul.f32 0.2, %v433_v23  ;;  %v452_v28 = vsel %vm444_vm14, %v430_v17, %v448_v22 }
 0x1de   :  { %v455_v27 = vsel %vm447_vm15, %v441_v20, %v451_v24 }
 0x1df   :  { %v458_v29 = vpack.c.bf16 %v455_v27, %v454_v26  ;;  %v453_v30 = vsel %vm445_vm0, %v433_v23, %v449_v25 }
 0x1e0   :  { %v457_v31 = vpack.c.bf16 %v453_v30, %v452_v28 }
 0x1e2   :  { %605 = vmatpush3.bf16.msra.mxu1 %v457_v31 }
 0x1e3   :  { %606 = vmatprep.subr.bf16.mxu1 %v665_v9 }
 0x1e6   :  { %607 = vmatpush3.bf16.msra.mxu1 %v458_v29 }
 0x1e9   :  { %609 = vmatmul.mubr.msk.bf16.vlgmr.msra.gmra.mrb[4].mxu1 %vm465_vm1, %v456_v32 }
 0x2bc   :  { %v503_v34 = vpop.f32.mrb[4].mxu1 }
 0x2bd   :  { %v504_v35 = vadd.f32 %v503_v34, %v463_v33  ;;  %v610_v36 = vpop.f32.mrb[5].mxu1 }
 0x2be   :  { %v506_v37 = vpop.f32.mrb[6].mxu1 }
 0x2bf   :  { %v510_v38 = vmul.f32 0.2, %v504_v35  ;;  %v611_v39 = vpop.f32.mrb[7].mxu1  ;;  %vm509_vm2 = vcmp.ge.f32.partialorder %v504_v35, 0.0 }
 0x2c1   :  { %v511_v40 = vsel %vm509_vm2, %v504_v35, %v510_v38 }
 0x2c2   :  { %512 = vst [vmem:[#allocation2] sm:$0x1] %v511_v40 }
 0x2c3   :  { %651 = shalt.err (!%p648_p4)
}
 0x2c4   :  { %s652_s15 = scalar_lea.hbm %s834_s9, 16 }
 0x2c5   :  { %p653_p5 = scmp.ne.s32.totalorder %s834_s9, %s652_s15  ;;  %p656_p6 = scmp.lt.u32.totalorder %s652_s15, %s834_s9 }
 0x2c7   :  { %p658_p7 = pnand %p656_p6, %p653_p5 }
 0x2c9   :  { %661 = shalt.err (!%p658_p7)
}
 0x2ca   :  { %522 = dma.vmem_to_hbm [thread:$0]  %s520_s11, 16, %s834_s9, [#allocation3]  }
 0x2cb   :  { %662 = dma.done.wait [#allocation3], 16  }
 0x2cc   :  { %663 = vsyncadd [#allocation3], 4294967280 }
 0x2cd   :  { %526 = vsyncpa [#allocation3], 1 }

</bundles_post_ra>
